<compile_context>
chip_gen: v6e
topology: v6e:2x2x1
jax: 0.10.0
libtpu: 0.0.40
codegen_flags: <defaults>
</compile_context>

<pallas_src>
import functools

import jax
import jax.numpy as jnp
from jax.experimental import pallas as pl
from jax.experimental.pallas import tpu as pltpu

BN_EPS = 1e-5
LANE = 128
SUB = 8


def _round_up(x, m):
    return (x + m - 1) // m * m


def _gin_kernel(adj_ref, x_ref, w1_ref, w2_ref, pv_ref, out_ref,
                *, n_nodes, n_edges, hid_p, dim_p):
    """One grid program per path: program 0 = nodes, program 1 = edges."""
    pid = pl.program_id(0)
    x = x_ref[...]                                  # (R, Dp) f32; padded rows/lanes zero

    # Message passing + eps self-term.  The adj block already holds (adj + eps*I)
    # for the node program and all-zeros for the edge program, so
    # u = x + adj_blk @ x covers both paths branch-free.
    # bf16 x bf16 -> fast MXU path; accumulation and the self term stay f32.
    neigh = jnp.dot(adj_ref[...], x.astype(jnp.bfloat16),
                    preferred_element_type=jnp.float32)
    u = x + neigh

    # Packed per-path parameter vectors: rows 0..3 = b1, b2, gamma, beta.
    b1 = pv_ref[0:1, 0:hid_p]
    b2 = pv_ref[1:2, 0:dim_p]
    gamma = pv_ref[2:3, 0:dim_p]
    beta = pv_ref[3:4, 0:dim_p]

    # apply_func: Linear -> ReLU -> Linear (bf16 operands, f32 accumulation).
    z1 = jnp.maximum(
        jnp.dot(u.astype(jnp.bfloat16), w1_ref[...],
                preferred_element_type=jnp.float32) + b1, 0.0)
    z = jnp.dot(z1.astype(jnp.bfloat16), w2_ref[...],
                preferred_element_type=jnp.float32) + b2

    # Batch-norm statistics over the valid rows only (padded rows are nonzero
    # after the bias adds, so mask them).  One-pass sum / sum-of-squares.
    count = jnp.where(pid == 0, n_nodes, n_edges)
    rows = jax.lax.broadcasted_iota(jnp.int32, z.shape, 0)
    zm = jnp.where(rows < count, z, 0.0)
    inv_n = 1.0 / count.astype(jnp.float32)
    mean = jnp.sum(zm, axis=0, keepdims=True) * inv_n
    mean_sq = jnp.sum(zm * zm, axis=0, keepdims=True) * inv_n
    var = jnp.maximum(mean_sq - mean * mean, 0.0)
    y = gamma * (z - mean) * jax.lax.rsqrt(var + BN_EPS) + beta

    # ReLU + residual (dropout is identity in eval mode).  Padded rows carry
    # junk but are sliced off in the wrapper.
    out_ref[...] = jnp.maximum(y, 0.0) + x


def gin_layer_forward(h, e, adj, params):
    """h: [N, D], e: [E, D], adj: [N, N] dense (adj[dst, src] = #edges src->dst)."""
    N, D = h.shape
    E, _ = e.shape
    H = params["w1"].shape[1]
    f32 = jnp.float32

    R = _round_up(max(N, E), SUB)       # shared row extent for the node / edge blocks
    Dp = _round_up(D, LANE)             # lane-pad the feature dim
    Hp = _round_up(H, LANE)             # lane-pad the hidden dim
    P = max(Dp, Hp)

    # --- stack node / edge features into one (2, R, Dp) f32 slab -------------
    x_all = jnp.zeros((2, R, Dp), f32)
    x_all = x_all.at[0, :N, :D].set(h.astype(f32))
    x_all = x_all.at[1, :E, :D].set(e.astype(f32))

    # --- adjacency: fold the (1+eps) self term in; edge program gets zeros ---
    # (adj + eps*I) @ x + x == (1 + eps) * x + adj @ x.   Traced ops -> jit-safe.
    # bf16 is exact for integer edge multiplicities up to 256.
    eps = params["eps"].astype(f32).reshape(())
    adj_node = adj.astype(f32) + eps * jnp.eye(N, dtype=f32)
    adj_all = jnp.zeros((2, R, R), f32).at[0, :N, :N].set(adj_node)
    adj_all = adj_all.astype(jnp.bfloat16)

    # --- MLP weights: bf16 for full-rate MXU; accumulation stays f32 ---------
    w1_p = jnp.pad(params["w1"].astype(f32),
                   ((0, Dp - D), (0, Hp - H))).astype(jnp.bfloat16)
    w2_p = jnp.pad(params["w2"].astype(f32),
                   ((0, Hp - H), (0, Dp - D))).astype(jnp.bfloat16)

    # --- pack the six small per-path vectors into one (2, 8, P) array --------
    def _row(v):
        v = v.astype(f32)
        return jnp.pad(v, (0, P - v.shape[0]))

    zero_row = jnp.zeros((P,), f32)
    pv = jnp.stack([
        jnp.stack([_row(params["b1"]), _row(params["b2"]),
                   _row(params["gamma_h"]), _row(params["beta_h"]),
                   zero_row, zero_row, zero_row, zero_row]),
        jnp.stack([_row(params["b1"]), _row(params["b2"]),
                   _row(params["gamma_e"]), _row(params["beta_e"]),
                   zero_row, zero_row, zero_row, zero_row]),
    ])                                   # (2, 8, P)

    kernel = functools.partial(_gin_kernel, n_nodes=N, n_edges=E,
                               hid_p=Hp, dim_p=Dp)

    flops = 2 * (2 * R * R * Dp) + 2 * (2 * R * Dp * Hp + 2 * R * Hp * Dp)
    bytes_accessed = (adj_all.size * 2 + x_all.size * 4
                      + 2 * 2 * (w1_p.size + w2_p.size)   # per-program weight DMA
                      + pv.size * 4 + 2 * R * Dp * 4)

    out = pl.pallas_call(
        kernel,
        grid=(2,),
        in_specs=[
            pl.BlockSpec((None, R, R), lambda i: (i, 0, 0)),    # (adj + eps*I) / zeros
            pl.BlockSpec((None, R, Dp), lambda i: (i, 0, 0)),   # h rows / e rows
            pl.BlockSpec((Dp, Hp), lambda i: (0, 0)),           # w1 (bf16)
            pl.BlockSpec((Hp, Dp), lambda i: (0, 0)),           # w2 (bf16)
            pl.BlockSpec((None, 8, P), lambda i: (i, 0, 0)),    # packed b1,b2,gamma,beta
        ],
        out_specs=pl.BlockSpec((None, R, Dp), lambda i: (i, 0, 0)),
        out_shape=jax.ShapeDtypeStruct((2, R, Dp), jnp.float32),
        compiler_params=pltpu.CompilerParams(
            dimension_semantics=("parallel",),   # node / edge paths on separate TCs (v7x)
            vmem_limit_bytes=32 * 1024 * 1024),
        cost_estimate=pl.CostEstimate(
            flops=flops, transcendentals=0, bytes_accessed=bytes_accessed),
    )(adj_all, x_all, w1_p, w2_p, pv)

    # Strip padding; slab 0 = node features, slab 1 = edge features.
    return out[0, :N, :D], out[1, :E, :D]


def _reference(h, e, adj, params):
    """Pure-JAX f32 reference of the same forward pass (for verification)."""
    def mlp(x):
        z = jnp.maximum(x @ params["w1"] + params["b1"], 0.0)
        return z @ params["w2"] + params["b2"]

    def norm(x, gamma, beta):
        m = jnp.mean(x, axis=0, keepdims=True)
        v = jnp.mean((x - m) ** 2, axis=0, keepdims=True)
        return gamma * (x - m) / jnp.sqrt(v + BN_EPS) + beta

    neigh = adj @ h
    hh = (1.0 + params["eps"][0]) * h + neigh
    hh = jnp.maximum(norm(mlp(hh), params["gamma_h"], params["beta_h"]), 0.0) + h
    ee = jnp.maximum(norm(mlp(e), params["gamma_e"], params["beta_e"]), 0.0) + e
    return hh, ee


if __name__ == "__main__":
    N, E, D, H = 32, 64, 32, 64  # nodes, edges, in_dim == out_dim, hidden

    key = jax.random.PRNGKey(0)
    k_h, k_e, k_src, k_dst, k_w1, k_b1, k_w2, k_b2 = jax.random.split(key, 8)

    h = jax.random.normal(k_h, (N, D), dtype=jnp.float32)
    e = jax.random.normal(k_e, (E, D), dtype=jnp.float32)

    # random directed graph -> dense adjacency (adj[dst, src] += 1.0)
    src = jax.random.randint(k_src, (E,), 0, N)
    dst = jax.random.randint(k_dst, (E,), 0, N)
    adj = jnp.zeros((N, N), dtype=jnp.float32).at[dst, src].add(1.0)

    params = {
        "eps": jnp.zeros((1,), dtype=jnp.float32),  # init_eps=0, learn_eps=False
        "w1": jax.random.normal(k_w1, (D, H), dtype=jnp.float32) * (1.0 / jnp.sqrt(D)),
        "b1": jax.random.normal(k_b1, (H,), dtype=jnp.float32) * 0.01,
        "w2": jax.random.normal(k_w2, (H, D), dtype=jnp.float32) * (1.0 / jnp.sqrt(H)),
        "b2": jax.random.normal(k_b2, (D,), dtype=jnp.float32) * 0.01,
        "gamma_h": jnp.ones((D,), dtype=jnp.float32),
        "beta_h": jnp.zeros((D,), dtype=jnp.float32),
        "gamma_e": jnp.ones((D,), dtype=jnp.float32) * 1.1,
        "beta_e": jnp.zeros((D,), dtype=jnp.float32) + 0.05,
    }

    h_out, e_out = gin_layer_forward(h, e, adj, params)
    jax.block_until_ready((h_out, e_out))

    h_ref, e_ref = _reference(h, e, adj, params)
    # Tolerance loosened vs. the pure-f32 version: the adjacency matmul and the
    # MLP run on the bf16 MXU path (f32 accumulation).
    assert jnp.allclose(h_out, h_ref, atol=5e-2, rtol=5e-2), "node path mismatch"
    assert jnp.allclose(e_out, e_ref, atol=5e-2, rtol=5e-2), "edge path mismatch"

    print("KERNEL_OK")
</pallas_src>

<mosaic_0001>
module attributes {stable_mosaic.version = 11 : i64} {
  func.func @_gin_kernel(%arg0: i32, %arg1: memref<1x64x64xbf16, #tpu.memory_space<vmem>>, %arg2: memref<1x64x128xf32, #tpu.memory_space<vmem>>, %arg3: memref<128x128xbf16, #tpu.memory_space<vmem>>, %arg4: memref<128x128xbf16, #tpu.memory_space<vmem>>, %arg5: memref<1x8x128xf32, #tpu.memory_space<vmem>>, %arg6: memref<1x64x128xf32, #tpu.memory_space<vmem>>) attributes {dimension_semantics = [#tpu.dimension_semantics<parallel>], iteration_bounds = array<i64: 2>, scalar_prefetch = 0 : i64, scratch_operands = 0 : i64, tpu.core_type = #tpu.core_type<tc>, window_params = [{transform_indices = @transform_0, window_bounds = array<i64: 1, 64, 64>}, {transform_indices = @transform_1, window_bounds = array<i64: 1, 64, 128>}, {pipeline_mode = #tpu.pipeline_mode<synchronous>, transform_indices = @transform_2, window_bounds = array<i64: 128, 128>}, {pipeline_mode = #tpu.pipeline_mode<synchronous>, transform_indices = @transform_3, window_bounds = array<i64: 128, 128>}, {transform_indices = @transform_4, window_bounds = array<i64: 1, 8, 128>}, {transform_indices = @transform_5, window_bounds = array<i64: 1, 64, 128>}]} {
    %c0 = arith.constant 0 : index
    %c0_0 = arith.constant 0 : index
    %c0_1 = arith.constant 0 : index
    %0 = vector.load %arg2[%c0, %c0_0, %c0_1] : memref<1x64x128xf32, #tpu.memory_space<vmem>>, vector<1x64x128xf32>
    %1 = vector.shape_cast %0 : vector<1x64x128xf32> to vector<64x128xf32>
    %c0_2 = arith.constant 0 : index
    %c0_3 = arith.constant 0 : index
    %c0_4 = arith.constant 0 : index
    %2 = vector.load %arg1[%c0_2, %c0_3, %c0_4] : memref<1x64x64xbf16, #tpu.memory_space<vmem>>, vector<1x64x64xbf16>
    %3 = vector.shape_cast %2 : vector<1x64x64xbf16> to vector<64x64xbf16>
    %4 = arith.truncf %1 : vector<64x128xf32> to vector<64x128xbf16>
    %cst = arith.constant dense<0.000000e+00> : vector<64x128xf32>
    %5 = tpu.matmul %3, %4, %cst {dimension_numbers = #tpu.dot_dimension_numbers<[1], [0], [0], [1], [0, 0, 1, 1], [], []>} : vector<64x64xbf16>, vector<64x128xbf16>, vector<64x128xf32> -> vector<64x128xf32>
    %6 = arith.addf %1, %5 : vector<64x128xf32>
    %c0_5 = arith.constant 0 : index
    %c0_6 = arith.constant 0 : index
    %c0_7 = arith.constant 0 : index
    %7 = vector.load %arg5[%c0_5, %c0_6, %c0_7] : memref<1x8x128xf32, #tpu.memory_space<vmem>>, vector<1x1x128xf32>
    %8 = vector.shape_cast %7 : vector<1x1x128xf32> to vector<1x128xf32>
    %c0_8 = arith.constant 0 : index
    %c1 = arith.constant 1 : index
    %c0_9 = arith.constant 0 : index
    %9 = vector.load %arg5[%c0_8, %c1, %c0_9] : memref<1x8x128xf32, #tpu.memory_space<vmem>>, vector<1x1x128xf32>
    %10 = vector.shape_cast %9 : vector<1x1x128xf32> to vector<1x128xf32>
    %c0_10 = arith.constant 0 : index
    %c2 = arith.constant 2 : index
    %c0_11 = arith.constant 0 : index
    %11 = vector.load %arg5[%c0_10, %c2, %c0_11] : memref<1x8x128xf32, #tpu.memory_space<vmem>>, vector<1x1x128xf32>
    %12 = vector.shape_cast %11 : vector<1x1x128xf32> to vector<1x128xf32>
    %c0_12 = arith.constant 0 : index
    %c3 = arith.constant 3 : index
    %c0_13 = arith.constant 0 : index
    %13 = vector.load %arg5[%c0_12, %c3, %c0_13] : memref<1x8x128xf32, #tpu.memory_space<vmem>>, vector<1x1x128xf32>
    %14 = vector.shape_cast %13 : vector<1x1x128xf32> to vector<1x128xf32>
    %15 = arith.truncf %6 : vector<64x128xf32> to vector<64x128xbf16>
    %c0_14 = arith.constant 0 : index
    %c0_15 = arith.constant 0 : index
    %16 = vector.load %arg3[%c0_14, %c0_15] : memref<128x128xbf16, #tpu.memory_space<vmem>>, vector<128x128xbf16>
    %cst_16 = arith.constant dense<0.000000e+00> : vector<64x128xf32>
    %17 = tpu.matmul %15, %16, %cst_16 {dimension_numbers = #tpu.dot_dimension_numbers<[1], [0], [0], [1], [0, 0, 1, 1], [], []>} : vector<64x128xbf16>, vector<128x128xbf16>, vector<64x128xf32> -> vector<64x128xf32>
    %18 = vector.broadcast %8 : vector<1x128xf32> to vector<64x128xf32>
    %19 = arith.addf %17, %18 : vector<64x128xf32>
    %cst_17 = arith.constant 0.000000e+00 : f32
    %20 = vector.broadcast %cst_17 : f32 to vector<64x128xf32>
    %21 = arith.maximumf %19, %20 : vector<64x128xf32>
    %22 = arith.truncf %21 : vector<64x128xf32> to vector<64x128xbf16>
    %c0_18 = arith.constant 0 : index
    %c0_19 = arith.constant 0 : index
    %23 = vector.load %arg4[%c0_18, %c0_19] : memref<128x128xbf16, #tpu.memory_space<vmem>>, vector<128x128xbf16>
    %cst_20 = arith.constant dense<0.000000e+00> : vector<64x128xf32>
    %24 = tpu.matmul %22, %23, %cst_20 {dimension_numbers = #tpu.dot_dimension_numbers<[1], [0], [0], [1], [0, 0, 1, 1], [], []>} : vector<64x128xbf16>, vector<128x128xbf16>, vector<64x128xf32> -> vector<64x128xf32>
    %25 = vector.broadcast %10 : vector<1x128xf32> to vector<64x128xf32>
    %26 = arith.addf %24, %25 : vector<64x128xf32>
    %c0_i32 = arith.constant 0 : i32
    %27 = arith.cmpi eq, %arg0, %c0_i32 : i32
    %c32_i32 = arith.constant 32 : i32
    %c64_i32 = arith.constant 64 : i32
    %28 = arith.select %27, %c32_i32, %c64_i32 : i32
    %29 = tpu.iota {dimensions = array<i32: 0>} : vector<64x128xi32>
    %30 = vector.broadcast %28 : i32 to vector<64x128xi32>
    %31 = arith.cmpi slt, %29, %30 : vector<64x128xi32>
    %cst_21 = arith.constant 0.000000e+00 : f32
    %32 = vector.broadcast %cst_21 : f32 to vector<64x128xf32>
    %33 = arith.select %31, %26, %32 : vector<64x128xi1>, vector<64x128xf32>
    %34 = arith.sitofp %28 : i32 to f32
    %cst_22 = arith.constant 1.000000e+00 : f32
    %35 = arith.divf %cst_22, %34 : f32
    %cst_23 = arith.constant dense<0.000000e+00> : vector<128xf32>
    %36 = vector.multi_reduction <add>, %33, %cst_23 [0] : vector<64x128xf32> to vector<128xf32>
    %37 = vector.shape_cast %36 : vector<128xf32> to vector<1x128xf32>
    %38 = vector.broadcast %35 : f32 to vector<1x128xf32>
    %39 = arith.mulf %37, %38 : vector<1x128xf32>
    %40 = arith.mulf %33, %33 : vector<64x128xf32>
    %cst_24 = arith.constant dense<0.000000e+00> : vector<128xf32>
    %41 = vector.multi_reduction <add>, %40, %cst_24 [0] : vector<64x128xf32> to vector<128xf32>
    %42 = vector.shape_cast %41 : vector<128xf32> to vector<1x128xf32>
    %43 = vector.broadcast %35 : f32 to vector<1x128xf32>
    %44 = arith.mulf %42, %43 : vector<1x128xf32>
    %45 = arith.mulf %39, %39 : vector<1x128xf32>
    %46 = arith.subf %44, %45 : vector<1x128xf32>
    %cst_25 = arith.constant 0.000000e+00 : f32
    %47 = vector.broadcast %cst_25 : f32 to vector<1x128xf32>
    %48 = arith.maximumf %46, %47 : vector<1x128xf32>
    %49 = vector.broadcast %39 : vector<1x128xf32> to vector<64x128xf32>
    %50 = arith.subf %26, %49 : vector<64x128xf32>
    %51 = vector.broadcast %12 : vector<1x128xf32> to vector<64x128xf32>
    %52 = arith.mulf %51, %50 : vector<64x128xf32>
    %cst_26 = arith.constant 9.99999974E-6 : f32
    %53 = vector.broadcast %cst_26 : f32 to vector<1x128xf32>
    %54 = arith.addf %48, %53 : vector<1x128xf32>
    %55 = math.rsqrt %54 : vector<1x128xf32>
    %56 = vector.broadcast %55 : vector<1x128xf32> to vector<64x128xf32>
    %57 = arith.mulf %52, %56 : vector<64x128xf32>
    %58 = vector.broadcast %14 : vector<1x128xf32> to vector<64x128xf32>
    %59 = arith.addf %57, %58 : vector<64x128xf32>
    %cst_27 = arith.constant 0.000000e+00 : f32
    %60 = vector.broadcast %cst_27 : f32 to vector<64x128xf32>
    %61 = arith.maximumf %59, %60 : vector<64x128xf32>
    %62 = arith.addf %61, %1 : vector<64x128xf32>
    %c0_28 = arith.constant 0 : index
    %c0_29 = arith.constant 0 : index
    %c0_30 = arith.constant 0 : index
    %63 = vector.load %arg6[%c0_28, %c0_29, %c0_30] : memref<1x64x128xf32, #tpu.memory_space<vmem>>, vector<1x64x128xf32>
    %64 = vector.shape_cast %63 : vector<1x64x128xf32> to vector<64x128xf32>
    %65 = vector.shape_cast %62 : vector<64x128xf32> to vector<1x64x128xf32>
    tpu.vector_store %arg6[%c0_28, %c0_29, %c0_30], %65 {strides = array<i32>} : memref<1x64x128xf32, #tpu.memory_space<vmem>>, vector<1x64x128xf32>,
    return
  }
  func.func @transform_0(%arg0: i32) -> (i32, i32, i32) {
    %c0_i32 = arith.constant 0 : i32
    %c0_i32_0 = arith.constant 0 : i32
    %c0_i32_1 = arith.constant 0 : i32
    return %arg0, %c0_i32, %c0_i32_0 : i32, i32, i32
  }
  func.func @transform_1(%arg0: i32) -> (i32, i32, i32) {
    %c0_i32 = arith.constant 0 : i32
    %c0_i32_0 = arith.constant 0 : i32
    %c0_i32_1 = arith.constant 0 : i32
    return %arg0, %c0_i32, %c0_i32_0 : i32, i32, i32
  }
  func.func @transform_2(%arg0: i32) -> (i32, i32) {
    %c0_i32 = arith.constant 0 : i32
    %c0_i32_0 = arith.constant 0 : i32
    %c0_i32_1 = arith.constant 0 : i32
    return %c0_i32, %c0_i32_0 : i32, i32
  }
  func.func @transform_3(%arg0: i32) -> (i32, i32) {
    %c0_i32 = arith.constant 0 : i32
    %c0_i32_0 = arith.constant 0 : i32
    %c0_i32_1 = arith.constant 0 : i32
    return %c0_i32, %c0_i32_0 : i32, i32
  }
  func.func @transform_4(%arg0: i32) -> (i32, i32, i32) {
    %c0_i32 = arith.constant 0 : i32
    %c0_i32_0 = arith.constant 0 : i32
    %c0_i32_1 = arith.constant 0 : i32
    return %arg0, %c0_i32, %c0_i32_0 : i32, i32, i32
  }
  func.func @transform_5(%arg0: i32) -> (i32, i32, i32) {
    %c0_i32 = arith.constant 0 : i32
    %c0_i32_0 = arith.constant 0 : i32
    %c0_i32_1 = arith.constant 0 : i32
    return %arg0, %c0_i32, %c0_i32_0 : i32, i32, i32
  }
}

</mosaic_0001>

<bundles_post_ra>
// kernel: tpu_custom_call.1
= control target key start
LH: loop header
LB: loop body
LE: loop exit
PB: predicated region body
PF: predicated region fallthrough
CT: control target
= control target key end

     0   :  { %s1942_s0 = inlined_call_operand.hbm [shape: bf16[2,64,64], index: 0, kind: input, shape index: {}]   ;;  %s1943_s1 = inlined_call_operand.hbm [shape: f32[2,64,128], index: 1, kind: input, shape index: {}]   ;;  %s1944_s2 = inlined_call_operand.hbm [shape: bf16[128,128], index: 2, kind: input, shape index: {}]   ;;  %s1945_s3 = inlined_call_operand.hbm [shape: bf16[128,128], index: 3, kind: input, shape index: {}]   ;;  %s1946_s4 = inlined_call_operand.hbm [shape: f32[2,8,128], index: 4, kind: input, shape index: {}]   ;;  %s1947_s5 = inlined_call_operand.hbm [shape: f32[2,64,128], index: 5, kind: output, shape index: {}]  }
   0x1   :  { %1962 = sst [smem:[#allocation21_spill]] %s1942_s0 }
   0x2   :  { %1963 = sst [smem:[#allocation22_spill]] %s1943_s1 }
   0x3   :  { %1964 = sst [smem:[#allocation23_spill]] %s1944_s2 }
   0x4   :  { %1965 = sst [smem:[#allocation24_spill]] %s1945_s3 }
   0x5   :  { %10 = vsyncpa [#allocation3], 0 }
   0x6   :  { %12 = vsyncpa [#allocation3 + $0x1], 0 }
   0x7   :  { %13 = vsyncpa [#allocation6], 0 }
   0x8   :  { %15 = vsyncpa [#allocation6 + $0x1], 0 }
   0x9   :  { %16 = vsyncpa [#allocation9], 0 }
   0xa   :  { %17 = vsyncpa [#allocation4], 0 }
   0xb   :  { %19 = vsyncpa [#allocation4 + $0x1], 0  ;;  %s1567_s18 = smov 0   ;;  %s1569_s19 = smov 0  }
   0xc   :  { %s1571_s20 = smov 0   ;;  %s1573_s21 = smov 0  }
   0xd LB: > { %1966 = sst [smem:[#allocation18_spill]] %s1519_s20  ;;  %s1588_s22 = sadd.s32 4294967295, %s1523_s21   ;;  %s1523_s21 = sphi %s1573_s21, %s1997_s21   ;;  %s1519_s20 = sphi %s1571_s20, %s1999_s20   ;;  %s1515_s19 = sphi %s1569_s19, %s2001_s19   ;;  %s1511_s18 = sphi %s1567_s18, %s2000_s18  }
   0xe   : > { %s1046_s23 = sadd.s32 4294967294, %s1523_s21   ;;  %s1592_s24 = sadd.s32 1, %s1523_s21  }
   0xf   : > { %1967 = sst [smem:[#allocation19_spill]] %s1592_s24  ;;  %s32_s25 = sadd.s32 1, %s1519_s20 }
  0x10   : > { %s29_s26 = ssub.s32 %s1523_s21, %s1592_s24  ;;  %p39_p0 = scmp.ne.s32.totalorder %s1519_s20, %s1515_s19 }
  0x11   : > { %p30_p1 = scmp.eq.s32.totalorder %s29_s26, 0  ;;  %p40_p2 = scmp.eq.s32.totalorder %s1523_s21, 0 }
  0x12   : > { %p45_p3 = scmp.ne.s32.totalorder %s1515_s19, %s1511_s18  ;;  %p1954_p4 = scmp.eq.s32.totalorder %s1588_s22, 0 }
  0x13   : > { %s1604_s27 = scalar_select %p30_p1, %s1519_s20, %s32_s25  }
  0x14   : > { %p1606_p5 = por %p40_p2, %p39_p0  ;;  %p1612_p6 = por %p1954_p4, %p45_p3 }
  0x15   : > { %1968 = sst [smem:[#allocation20_spill]] %s1604_s27  ;;  %p163_p7 = scmp.eq.s32.totalorder %s1588_s22, 1 }
  0x16   : > { %s1970_s29 = scalar_select %p1612_p6, 1, 0 }
  0x17   : > { %p169_p8 = scmp.eq.s32.totalorder %s1046_s23, 1  ;;  %p1047_p9 = scmp.ge.s32.totalorder %s1523_s21, 1 }
  0x18   : > { %p176_p10 = scmp.lt.s32.totalorder %s1523_s21, 3  ;;  %p1619_p11 = por %p163_p7, %p39_p0 }
  0x19   : > { %p1623_p12 = por %p169_p8, %p45_p3  ;;  %s1525_s8 = smov [#allocation7]  }
  0x1a   : > { %s1971_s30 = scalar_select %p1619_p11, 1, 0 }
  0x1b   : > { %s1972_s6 = scalar_select %p1623_p12, 1, 0 }
  0x1c   : > { %p1627_p13 = pnand %p1047_p9, %p176_p10  ;;  %s188_s9 = sshll.u32 %s1525_s8, 4  ;;  %s189_s9 = int_to_ptr.vmem [resolvable:$true] %s188_s9 }
  0x1d   : > { %p1239_p3 = scmp.lt.s32.totalorder %s1523_s21, 2  ;;  %s1318_s12 = scalar_lea.vmem %s189_s9, 1024 }
  0x1e   : > { %s1973_s7 = scalar_select %p1627_p13, 1, 0 }
  0x1f   : > { %p1216_p1 = pneg %p1627_p13  ;;  %p1319_p8 = scmp.ne.s32.totalorder %s189_s9, %s1318_s12 }
  0x20   : > { %p1326_p12 = scmp.lt.s32.totalorder %s189_s9, %s189_s9  ;;  %p1327_p11 = scmp.lt.s32.totalorder %s1318_s12, %s1318_s12 }
  0x21   : > { %p1635_p2 = pnand %p1216_p1, %p1954_p4 }
  0x22   : > { %p1328_p6 = por %p1327_p11, %p1326_p12 }
  0x23   : > { %s1974_s10 = scalar_select %p1635_p2, 1, 0 }
  0x24   : > { %p1955_p7 = pneg %p1635_p2 }
  0x26   : > { %p1321_p9 = pnand %p1319_p8, %p1955_p7 }
  0x28   : > { %p1322_p10 = pneg %p1321_p9 }
  0x2a   : > { %p1329_p1 = pnand %p1328_p6, %p1322_p10 }
  0x2c   : > { %1332 = shalt.err (!%p1329_p1)
}
  0x2d   : > { %s1950_s13 = smov 64   ;;  %s1952_s14 = smov 4  }
  0x2e   : > { %s1975_s2 = sld [smem:[#allocation23_spill]]  ;;  %s1656_s17 = sand.u32 1, %s1519_s20  }
  0x2f   : > { %s1099_s23 = sshll.u32 %s1523_s21, 9  ;;  %s1051_s25 = sshll.u32 %s1656_s17, 5 }
  0x30   : > { %s1976_s0 = sld [smem:[#allocation21_spill]]  ;;  %p1669_p6 = pnand %p1239_p3, %p1606_p5 }
  0x31   : > { %s1978_s16 = sand.u32 1, %s1523_s21  }
  0x32   : > { %p1683_p12 = pneg %p1669_p6 }
  0x34   : > { %1219 = dma.hbm_to_vmem [thread:$0]  (!%p1635_p2), %s1975_s2, 1024, %s189_s9, [#allocation6], %s1950_s13, %s1950_s13, %s1952_s14  }
  0x35   : > { %s219_s9 = scalar_lea.vmem [#allocation2], %s1051_s25  ;;  %s1677_s13 = scalar_lea.sflag [#allocation3], %s1978_s16 }
  0x36   : > { %s1663_s12 = scalar_lea.hbm %s1976_s0, %s1099_s23  ;;  %s226_s15 = sshll.u32 %s219_s9, 4  ;;  %s1673_s15 = int_to_ptr.vmem [resolvable:$true] %s226_s15 }
  0x37   : > { %s1333_s26 = scalar_lea.hbm %s1663_s12, 512  ;;  %s1338_s25 = scalar_lea.hbm %s1976_s0, 1024 }
  0x38   : > { %p1334_p11 = scmp.ne.s32.totalorder %s1663_s12, %s1333_s26  ;;  %p1339_p8 = scmp.lt.s32.totalorder %s1663_s12, %s1976_s0 }
  0x39   : > { %p1340_p9 = scmp.lt.s32.totalorder %s1338_s25, %s1333_s26 }
  0x3a   : > { %p1336_p5 = pnand %p1683_p12, %p1334_p11 }
  0x3b   : > { %p1341_p10 = por %p1340_p9, %p1339_p8 }
  0x3c   : > { %p1337_p3 = pneg %p1336_p5 }
  0x3e   : > { %p1342_p1 = pnand %p1341_p10, %p1337_p3 }
  0x40   : > { %1345 = shalt.err (!%p1342_p1)
}
  0x41   : > { %s1346_s16 = scalar_lea.vmem %s1673_s15, 512  ;;  %s1528_s2 = smov [#allocation2]  }
  0x42   : > { %p1347_p0 = scmp.ne.s32.totalorder %s1673_s15, %s1346_s16  ;;  %s1351_s23 = sshll.u32 %s1528_s2, 4  ;;  %s1352_s23 = int_to_ptr.vmem [resolvable:$false] %s1351_s23 }
  0x43   : > { %s1353_s8 = scalar_lea.vmem %s1352_s23, 1024  ;;  %p1354_p4 = scmp.lt.s32.totalorder %s1673_s15, %s1352_s23 }
  0x44   : > { %p1349_p11 = pnand %p1347_p0, %p1683_p12  ;;  %p1355_p7 = scmp.lt.s32.totalorder %s1353_s8, %s1346_s16 }
  0x46   : > { %p1350_p5 = pneg %p1349_p11  ;;  %p1356_p13 = por %p1355_p7, %p1354_p4 }
  0x48   : > { %p1357_p2 = pnand %p1356_p13, %p1350_p5 }
  0x4a   : > { %1360 = shalt.err (!%p1357_p2)
}
  0x4b   : > { %s1980_s14 = smov 4   ;;  %s1981_s26 = smov 64  }
  0x4c   : > { %1226 = dma.hbm_to_vmem [thread:$0]  (!%p1669_p6), %s1663_s12, 512, %s1673_s15, %s1677_s13, %s1981_s26, %s1981_s26, %s1980_s14  }
  0x4d   : > { %s1054_s2 = sshll.u32 %s1656_s17, 6  ;;  %s1529_s25 = smov [#allocation8]  }
  0x4e   : > { %s201_s9 = sshll.u32 %s1529_s25, 4  ;;  %s1100_s16 = sshll.u32 %s1523_s21, 10  ;;  %s202_s9 = int_to_ptr.vmem [resolvable:$true] %s201_s9 }
  0x4f   : > { %s1372_s23 = scalar_lea.vmem %s202_s9, 1024  ;;  %p1982_p13 = scmp.ne.s32.totalorder %s1974_s10, 0 }
  0x50   : > { %p1373_p4 = scmp.ne.s32.totalorder %s202_s9, %s1372_s23  ;;  %p1380_p3 = scmp.lt.s32.totalorder %s202_s9, %s202_s9 }
  0x51   : > { %p1983_p2 = pneg %p1982_p13  ;;  %p1381_p8 = scmp.lt.s32.totalorder %s1372_s23, %s1372_s23 }
  0x53   : > { %p1375_p0 = pnand %p1373_p4, %p1983_p2  ;;  %p1382_p9 = por %p1381_p8, %p1380_p3 }
  0x55   : > { %p1376_p7 = pneg %p1375_p0 }
  0x57   : > { %p1383_p10 = pnand %p1382_p9, %p1376_p7 }
  0x59   : > { %1386 = shalt.err (!%p1383_p10)
}
  0x5a   : > { %s1984_s3 = sld [smem:[#allocation24_spill]]  ;;  %s240_s23 = scalar_lea.vmem [#allocation5], %s1054_s2 }
  0x5b   : > { %s1985_s1 = sld [smem:[#allocation22_spill]]  ;;  %s247_s10 = sshll.u32 %s240_s23, 4  ;;  %s1727_s10 = int_to_ptr.vmem [resolvable:$true] %s247_s10 }
  0x5c   : > { %s1057_s27 = sshll.u32 %s1656_s17, 3  ;;  %s1986_s20 = sand.u32 1, %s1523_s21  }
  0x5d   : > { %s1732_s24 = scalar_lea.sflag [#allocation6], %s1986_s20 }
  0x60   : > { %1222 = dma.hbm_to_vmem [thread:$0]  (!%p1982_p13), %s1984_s3, 1024, %s202_s9, [#allocation9], %s1981_s26, %s1981_s26, %s1980_s14  }
  0x61   : > { %s1725_s0 = scalar_lea.hbm %s1985_s1, %s1100_s16  ;;  %s1392_s9 = scalar_lea.hbm %s1985_s1, 2048 }
  0x62   : > { %s1387_s12 = scalar_lea.hbm %s1725_s0, 1024  ;;  %p1393_p4 = scmp.lt.s32.totalorder %s1725_s0, %s1985_s1 }
  0x63   : > { %p1388_p1 = scmp.ne.s32.totalorder %s1725_s0, %s1387_s12  ;;  %p1394_p13 = scmp.lt.s32.totalorder %s1392_s9, %s1387_s12 }
  0x65   : > { %p1390_p11 = pnand %p1388_p1, %p1683_p12  ;;  %p1395_p2 = por %p1394_p13, %p1393_p4 }
  0x67   : > { %p1391_p5 = pneg %p1390_p11 }
  0x69   : > { %p1396_p0 = pnand %p1395_p2, %p1391_p5 }
  0x6b   : > { %1399 = shalt.err (!%p1396_p0)
}
  0x6c   : > { %s1400_s20 = scalar_lea.vmem %s1727_s10, 1024  ;;  %s1530_s2 = smov [#allocation5]  }
  0x6d   : > { %p1401_p7 = scmp.ne.s32.totalorder %s1727_s10, %s1400_s20  ;;  %s1405_s8 = sshll.u32 %s1530_s2, 4  ;;  %s1406_s8 = int_to_ptr.vmem [resolvable:$false] %s1405_s8 }
  0x6e   : > { %s1407_s25 = scalar_lea.vmem %s1406_s8, 2048  ;;  %p1408_p9 = scmp.lt.s32.totalorder %s1727_s10, %s1406_s8 }
  0x6f   : > { %p1403_p3 = pnand %p1401_p7, %p1683_p12  ;;  %p1409_p10 = scmp.lt.s32.totalorder %s1407_s25, %s1400_s20 }
  0x71   : > { %p1404_p8 = pneg %p1403_p3  ;;  %p1410_p1 = por %p1409_p10, %p1408_p9 }
  0x73   : > { %p1411_p11 = pnand %p1410_p1, %p1404_p8 }
  0x75   : > { %1414 = shalt.err (!%p1411_p11)
}
  0x76   : > { %s1531_s23 = smov 128   ;;  %s1532_s12 = smov 8  }
  0x77   : > { %1229 = dma.hbm_to_vmem [thread:$0]  (!%p1669_p6), %s1725_s0, 1024, %s1727_s10, %s1732_s24, %s1531_s23, %s1531_s23, %s1532_s12  }
  0x78   : > { %s1058_s14 = sshll.u32 %s1523_s21, 7  ;;  %s261_s15 = scalar_lea.vmem [#allocation10], %s1057_s27 }
  0x79   : > { %s266_s16 = scalar_lea.hbm %s1946_s4, %s1058_s14  ;;  %s268_s20 = sshll.u32 %s261_s15, 4  ;;  %s269_s20 = int_to_ptr.vmem [resolvable:$true] %s268_s20 }
  0x7a   : > { %s1415_s2 = scalar_lea.hbm %s266_s16, 128  ;;  %s1420_s1 = scalar_lea.hbm %s1946_s4, 256 }
  0x7b   : > { %p1416_p5 = scmp.ne.s32.totalorder %s266_s16, %s1415_s2  ;;  %p1421_p2 = scmp.lt.s32.totalorder %s266_s16, %s1946_s4 }
  0x7c   : > { %p1422_p0 = scmp.lt.s32.totalorder %s1420_s1, %s1415_s2 }
  0x7d   : > { %p1418_p4 = pnand %p1416_p5, %p1683_p12 }
  0x7e   : > { %p1423_p7 = por %p1422_p0, %p1421_p2 }
  0x7f   : > { %p1419_p13 = pneg %p1418_p4 }
  0x81   : > { %p1424_p3 = pnand %p1423_p7, %p1419_p13 }
  0x83   : > { %1427 = shalt.err (!%p1424_p3)
}
  0x84   : > { %s1428_s24 = scalar_lea.vmem %s269_s20, 128  ;;  %s1533_s27 = smov [#allocation10]  }
  0x85   : > { %p1429_p8 = scmp.ne.s32.totalorder %s269_s20, %s1428_s24  ;;  %s1433_s17 = sshll.u32 %s1533_s27, 4  ;;  %s1434_s17 = int_to_ptr.vmem [resolvable:$false] %s1433_s17 }
  0x86   : > { %s1435_s10 = scalar_lea.vmem %s1434_s17, 256  ;;  %p1436_p1 = scmp.lt.s32.totalorder %s269_s20, %s1434_s17 }
  0x87   : > { %p1431_p9 = pnand %p1429_p8, %p1683_p12  ;;  %p1437_p11 = scmp.lt.s32.totalorder %s1435_s10, %s1428_s24 }
  0x89   : > { %p1432_p10 = pneg %p1431_p9  ;;  %p1438_p5 = por %p1437_p11, %p1436_p1 }
  0x8b   : > { %p1439_p4 = pnand %p1438_p5, %p1432_p10 }
  0x8d   : > { %1442 = shalt.err (!%p1439_p4)
}
  0x8e   : > { %1232 = dma.hbm_to_vmem [thread:$0]  (!%p1669_p6), %s266_s16, 128, %s269_s20, %s1677_s13  }
  0x8f   : > { %p1987_p13 = scmp.ne.s32.totalorder %s1973_s7, 0 }
  0x90   : > { %s279_s1 = sand.u32 (!%p1987_p13), 1, %s1588_s22   ;;  %s1778_s3 = sand.u32 (!%p1987_p13), 1, %s1515_s19  }
  0x91   : > { %277 = sbr.rel (%p1987_p13) target bundleno = 870 (0x366), region = 40  ;;  %s1060_s28 = sshll.u32 (!%p1987_p13), %s1778_s3, 5 }
  0x92   : > { %s280_s23 = scalar_lea.sflag (!%p1987_p13), [#allocation3], %s279_s1  ;;  %s1781_s12 = scalar_lea.vmem (!%p1987_p13), [#allocation2], %s1060_s28 }
  0x93   : > { %p1988_p12 = scmp.ne.s32.totalorder (!%p1987_p13), %s1970_s29, 0 }
  0x96   : > { %1486 = dma.done.wait (%p1988_p12), %s280_s23, 512  }
  0x97   : > { %1488 = vsyncadd (%p1988_p12), %s280_s23, 4294966784  ;;  %s1061_s7 = sshll.u32 %s1778_s3, 6  ;;  %s289_s11 = scalar_lea.sflag [#allocation6], %s279_s1 }
  0x98   : > { %s292_s13 = scalar_lea.vmem [#allocation5], %s1061_s7 }
  0x99   : > { %1490 = dma.done.wait (%p1988_p12), %s289_s11, 1024  }
  0x9a   : > { %1492 = vsyncadd (%p1988_p12), %s289_s11, 4294966272  ;;  %p1989_p6 = scmp.eq.s32.totalorder %s1588_s22, 0 }
  0x9c   : > { %1494 = dma.done.wait (%p1989_p6), [#allocation6], 1024   ;;  %p1990_p2 = pmov %p1989_p6 }
  0x9e   : > { %1496 = vsyncadd (%p1990_p2), [#allocation6], 4294966272  ;;  %p1991_p0 = pmov %p1990_p2 }
  0xa0   : > { %1498 = dma.done.wait (%p1991_p0), [#allocation9], 1024   ;;  %p1992_p7 = pmov %p1991_p0 }
  0xa1   : > { %s1064_s14 = sshll.u32 %s1778_s3, 3 }
  0xa2   : > { %1500 = vsyncadd (%p1992_p7), [#allocation9], 4294966272  ;;  %s1803_s26 = scalar_lea.vmem [#allocation10], %s1064_s14 }
  0xa3   : > { %1502 = dma.done.wait (%p1988_p12), %s280_s23, 128  }
  0xa4   : > { %1504 = vsyncadd (%p1988_p12), %s280_s23, 4294967168  ;;  %v1809_v0 = vld [vmem:[%s292_s13 + $0x30] sm:$0xff]  ;;  %v1811_v1 = vld [vmem:[%s292_s13 + $0x38] sm:$0xff]  ;;  %vm387_vm0 = vcmask 523264   ;;  %p1993_p3 = pmov %p1991_p0  ;;  %s1101_s15 = sshll.u32 %s1588_s22, 10 }
  0xa5   : > { %v1813_v2 = vld [vmem:[%s292_s13 + $0x20] sm:$0xff]  ;;  %v366_v3 = vpack.c.bf16 %v1811_v1, %v1809_v0  ;;  %v1817_v4 = vld [vmem:[%s292_s13 + $0x28] sm:$0xff]  ;;  %v1821_v6 = vld [vmem:[%s292_s13 + $0x10] sm:$0xff]  ;;  %s345_s20 = scalar_lea.vmem [#allocation11], %s1061_s7  ;;  %s1893_s25 = scalar_lea.hbm %s1947_s5, %s1101_s15 }
  0xa6   : > { %v365_v5 = vpack.c.bf16 %v1817_v4, %v1813_v2  ;;  %v1823_v7 = vld [vmem:[%s292_s13 + $0x18] sm:$0xff]  ;;  %v1283_v8 = vld [vmem:[%s1781_s12] sm:$0xff]   ;;  %v1831_v11 = vld [vmem:[%s292_s13 + $0x8] sm:$0xff]  ;;  %s1851_s29 = scalar_select %p1993_p3, 32, 64 }
  0xa7   : > { %1134 = vmatprep.subr.bf16.mxu0 %v366_v3  ;;  %v364_v9 = vpack.c.bf16 %v1823_v7, %v1821_v6  ;;  %v1828_v10 = vld [vmem:[%s292_s13] sm:$0xff]  ;;  %1142 = vmatprep.mubr.msk.bf16.mxu0 %vm387_vm0, %v1283_v8  ;;  %v1287_v12 = vld [vmem:[#allocation7 + $0x38] sm:$0xff]   ;;  %v1288_v13 = vld [vmem:[#allocation7 + $0x30] sm:$0xff]   ;;  %s911_s2 = sshll.u32 %s345_s20, 4  ;;  %s898_s0 = scalar_lea.sflag [#allocation4], %s1778_s3  ;;  %s1895_s2 = int_to_ptr.vmem [resolvable:$true] %s911_s2 }
  0xa8   : > { %1135 = vmatpush3.bf16.msra.mxu0 %v366_v3  ;;  %v363_v14 = vpack.c.bf16 %v1831_v11, %v1828_v10  ;;  %1150 = vmatprep.subr.bf16.mxu1 %v1287_v12  ;;  %v1289_v15 = vld [vmem:[#allocation7 + $0x28] sm:$0xff]   ;;  %v1290_v17 = vld [vmem:[#allocation7 + $0x20] sm:$0xff]   ;;  %v1285_v18 = vld [vmem:[%s1781_s12 + $0x10] sm:$0xff]   ;;  %s787_s9 = scvt.s32.f32 %s1851_s29  ;;  %s1443_s24 = scalar_lea.vmem %s1895_s2, 1024 }
  0xa9   : > { %1136 = vmatprep.subr.bf16.mxu0 %v365_v5  ;;  %1151 = vmatpush3.bf16.msra.mxu1 %v1287_v12  ;;  %v1284_v16 = vld [vmem:[%s1781_s12 + $0x8] sm:$0xff]   ;;  %v1291_v19 = vld [vmem:[#allocation7 + $0x18] sm:$0xff]   ;;  %v1292_v21 = vld [vmem:[#allocation7 + $0x10] sm:$0xff]   ;;  %p1444_p8 = scmp.ne.s32.totalorder %s1895_s2, %s1443_s24  ;;  %p1994_p9 = scmp.ne.s32.totalorder %s1971_s30, 0 }
  0xaa   : > { %1152 = vmatprep.subr.bf16.mxu1 %v1288_v13  ;;  %v1286_v20 = vld [vmem:[%s1781_s12 + $0x18] sm:$0xff]   ;;  %v1293_v22 = vld [vmem:[#allocation7 + $0x8] sm:$0xff]   ;;  %v1294_v23 = vld [vmem:[#allocation7] sm:$0xff]   ;;  %v788_v52 = vstv %s787_s9  ;;  %s1534_s27 = smov [#allocation11]  }
  0xab   : > { %v1295_v24 = vld [vmem:[#allocation8 + $0x38] sm:$0xff]   ;;  %v1296_v25 = vld [vmem:[#allocation8 + $0x30] sm:$0xff]   ;;  %v1297_v26 = vld [vmem:[#allocation8 + $0x28] sm:$0xff]   ;;  %1303 = vrcp.f32 %v788_v52  ;;  %p1445_p10 = pnand %p1444_p8, %p1994_p9  ;;  %s1447_s17 = sshll.u32 %s1534_s27, 4  ;;  %s1448_s17 = int_to_ptr.vmem [resolvable:$false] %s1447_s17 }
  0xac   : > { %1137 = vmatpush3.bf16.msra.mxu0 %v365_v5  ;;  %v1298_v27 = vld [vmem:[#allocation8 + $0x20] sm:$0xff]   ;;  %v1299_v28 = vld [vmem:[#allocation8 + $0x18] sm:$0xff]   ;;  %v1300_v49 = vld [vmem:[#allocation8 + $0x10] sm:$0xff]   ;;  %s1449_s10 = scalar_lea.vmem %s1448_s17, 2048  ;;  %p1450_p11 = scmp.lt.s32.totalorder %s1895_s2, %s1448_s17 }
  0xad   : > { %1138 = vmatprep.subr.bf16.mxu0 %v364_v9  ;;  %1153 = vmatpush3.bf16.msra.mxu1 %v1288_v13  ;;  %v1301_v50 = vld [vmem:[#allocation8 + $0x8] sm:$0xff]   ;;  %v1302_v51 = vld [vmem:[#allocation8] sm:$0xff]   ;;  %p1446_p1 = pneg %p1445_p10  ;;  %p1451_p5 = scmp.lt.s32.totalorder %s1449_s10, %s1443_s24 }
  0xae   : > { %1154 = vmatprep.subr.bf16.mxu1 %v1289_v15  ;;  %v1074_v56 = vld [vmem:[%s1803_s26] ss:$0 sm:$0xff] }
  0xaf   : > { %p1452_p4 = por %p1451_p5, %p1450_p11 }
  0xb0   : > { %1139 = vmatpush3.bf16.msra.mxu0 %v364_v9 }
  0xb1   : > { %1140 = vmatprep.subr.bf16.mxu0 %v363_v14  ;;  %1155 = vmatpush3.bf16.msra.mxu1 %v1289_v15  ;;  %p1453_p13 = pnand %p1452_p4, %p1446_p1 }
  0xb2   : > { %1156 = vmatprep.subr.bf16.mxu1 %v1290_v17 }
  0xb4   : > { %1141 = vmatpush3.bf16.msra.mxu0 %v363_v14 }
  0xb5   : > { %1157 = vmatpush3.bf16.msra.mxu1 %v1290_v17  ;;  %1174 = vmatprep.subr.bf16.mxu0 %v1295_v24 }
  0xb6   : > { %1158 = vmatprep.subr.bf16.mxu1 %v1291_v19 }
  0xb7   : > { %1143 = vmatmul.mubr.msk.bf16.vlgmr.msra.gmra.mxu0 %vm387_vm0, %v1284_v16 }
  0xb8   : > { %1146 = vmatprep.mubr.msk.bf16.mxu0 %vm387_vm0, %v1285_v18  ;;  %1175 = vmatpush3.bf16.msra.mxu0 %v1295_v24  ;;  %v1304_v53 = vpop.eup %1303 }
  0xb9   : > { %1159 = vmatpush3.bf16.msra.mxu1 %v1291_v19  ;;  %1176 = vmatprep.subr.bf16.mxu0 %v1296_v25  ;;  %1198 = vpush %v1304_v53 }
  0xba   : > { %1160 = vmatprep.subr.bf16.mxu1 %v1292_v21 }
  0xbc   : > { %1177 = vmatpush3.bf16.msra.mxu0 %v1296_v25 }
  0xbd   : > { %1161 = vmatpush3.bf16.msra.mxu1 %v1292_v21  ;;  %1178 = vmatprep.subr.bf16.mxu0 %v1297_v26 }
  0xbe   : > { %1162 = vmatprep.subr.bf16.mxu1 %v1293_v22 }
  0xbf   : > { %1147 = vmatmul.mubr.msk.bf16.gmra.mxu0 %vm387_vm0, %v1286_v20 }
  0xc0   : > { %1179 = vmatpush3.bf16.msra.mxu0 %v1297_v26 }
  0xc1   : > { %1163 = vmatpush3.bf16.msra.mxu1 %v1293_v22  ;;  %1180 = vmatprep.subr.bf16.mxu0 %v1298_v27 }
  0xc2   : > { %1164 = vmatprep.subr.bf16.mxu1 %v1294_v23 }
  0xc4   : > { %1181 = vmatpush3.bf16.msra.mxu0 %v1298_v27  ;;  %v761_v27 = vlaneseq }
  0xc5   : > { %1165 = vmatpush3.bf16.msra.mxu1 %v1294_v23  ;;  %1182 = vmatprep.subr.bf16.mxu0 %v1299_v28 }
  0xc8   : > { %1183 = vmatpush3.bf16.msra.mxu0 %v1299_v28  ;;  %v762_v28 = vshrl.u32 %v761_v27, 7 }
  0xc9   : > { %1184 = vmatprep.subr.bf16.mxu0 %v1300_v49 }
  0xca   : > { %v767_v52 = vadd.s32 40, %v762_v28 }
  0xcc   : > { %1185 = vmatpush3.bf16.msra.mxu0 %v1300_v49 }
  0xcd   : > { %1186 = vmatprep.subr.bf16.mxu0 %v1301_v50 }
  0xd0   : > { %1187 = vmatpush3.bf16.msra.mxu0 %v1301_v50 }
  0xd1   : > { %1188 = vmatprep.subr.bf16.mxu0 %v1302_v51 }
  0xd4   : > { %1189 = vmatpush3.bf16.msra.mxu0 %v1302_v51 }
  0xea   : > { %s1199_s16 = spop %1198 }
 0x177   : > { %v1144_v29 = vpop.f32.mrf.mxu0 }
 0x178   : > { %v467_v36 = vadd.f32 %v1144_v29, %v1821_v6 }
 0x179   : > { %v434_v30 = vpop.f32.mrf.mxu0 }
 0x17a   : > { %v465_v34 = vadd.f32 %v434_v30, %v1828_v10  ;;  %v1083_v30 = vld [vmem:[%s1803_s26 + $0x1] ss:$0 sm:$0xff] }
 0x17b   : > { %v1145_v31 = vpop.f32.mrf.mxu0 }
 0x17c   : > { %v468_v32 = vadd.f32 %v1145_v31, %v1823_v7  ;;  %v764_v31 = vadd.s32 16, %v762_v28 }
 0x17d   : > { %v437_v33 = vpop.f32.mrf.mxu0 }
 0x17e   : > { %v466_v35 = vadd.f32 %v437_v33, %v1831_v11  ;;  %v478_v39 = vpack.c.bf16 %v468_v32, %v467_v36  ;;  %v763_v33 = vadd.s32 8, %v762_v28 }
 0x17f   : > { %v1148_v37 = vpop.f32.mrf.mxu0 }
 0x180   : > { %v477_v38 = vpack.c.bf16 %v466_v35, %v465_v34  ;;  %v471_v46 = vadd.f32 %v1148_v37, %v1809_v0  ;;  %v770_v34 = vstv %s1851_s29  ;;  %v765_v37 = vadd.s32 24, %v762_v28 }
 0x181   : > { %v450_v40 = vpop.f32.mrf.mxu0  ;;  %vm771_vm1 = vcmp.lt.s32.totalorder %v762_v28, %v770_v34  ;;  %vm773_vm2 = vcmp.lt.s32.totalorder %v764_v31, %v770_v34  ;;  %vm772_vm3 = vcmp.lt.s32.totalorder %v763_v33, %v770_v34  ;;  %vm776_vm7 = vcmp.lt.s32.totalorder %v767_v52, %v770_v34 }
 0x182   : > { %1166 = vmatprep.mubr.bf16.mxu1 %v477_v38  ;;  %v469_v44 = vadd.f32 %v450_v40, %v1813_v2  ;;  %vm774_vm4 = vcmp.lt.s32.totalorder %v765_v37, %v770_v34 }
 0x183   : > { %v1149_v41 = vpop.f32.mrf.mxu0  ;;  %1167 = vmatmul.mubr.bf16.vlgmr.msra.gmra.mxu1 %v478_v39  ;;  %v766_v39 = vadd.s32 32, %v762_v28 }
 0x184   : > { %v472_v42 = vadd.f32 %v1149_v41, %v1811_v1 }
 0x185   : > { %v453_v43 = vpop.f32.mrf.mxu0  ;;  %vm775_vm5 = vcmp.lt.s32.totalorder %v766_v39, %v770_v34  ;;  %v804_v39 = vstv %s1199_s16 }
 0x186   : > { %v470_v45 = vadd.f32 %v453_v43, %v1817_v4  ;;  %v480_v48 = vpack.c.bf16 %v472_v42, %v471_v46 }
 0x188   : > { %v479_v47 = vpack.c.bf16 %v470_v45, %v469_v44 }
 0x18a   : > { %1170 = vmatprep.mubr.bf16.mxu1 %v479_v47  ;;  %v768_v47 = vadd.s32 48, %v762_v28 }
 0x18b   : > { %1171 = vmatmul.mubr.bf16.gmra.mxu1 %v480_v48 }
 0x18c   : > { %vm777_vm6 = vcmp.lt.s32.totalorder %v768_v47, %v770_v34 }
 0x243   : > { %v1168_v54 = vpop.f32.mrf.mxu1 }
 0x244   : > { %v592_v60 = vadd.f32 %v1168_v54, %v1074_v56 }
 0x245   : > { %v583_v55 = vpop.f32.mrf.mxu1 }
 0x246   : > { %v584_v58 = vadd.f32 %v1074_v56, %v583_v55  ;;  %v616_v9 = vmax.f32 %v592_v60, 0.0 }
 0x247   : > { %v1169_v57 = vpop.f32.mrf.mxu1 }
 0x248   : > { %v595_v59 = vadd.f32 %v1169_v57, %v1074_v56  ;;  %v614_v5 = vmax.f32 %v584_v58, 0.0 }
 0x249   : > { %v586_v61 = vpop.f32.mrf.mxu1 }
 0x24a   : > { %v587_v62 = vadd.f32 %v1074_v56, %v586_v61  ;;  %v617_v63 = vmax.f32 %v595_v59, 0.0  ;;  %v769_v59 = vadd.s32 56, %v762_v28 }
 0x24b   : > { %v1172_v3 = vpop.f32.mrf.mxu1 }
 0x24c   : > { %v615_v8 = vmax.f32 %v587_v62, 0.0  ;;  %v623_v14 = vpack.c.bf16 %v617_v63, %v616_v9  ;;  %v608_v18 = vadd.f32 %v1172_v3, %v1074_v56  ;;  %vm778_vm8 = vcmp.lt.s32.totalorder %v769_v59, %v770_v34 }
 0x24d   : > { %v599_v12 = vpop.f32.mrf.mxu1 }
 0x24e   : > { %v622_v13 = vpack.c.bf16 %v615_v8, %v614_v5  ;;  %v600_v16 = vadd.f32 %v1074_v56, %v599_v12  ;;  %v620_v24 = vmax.f32 %v608_v18, 0.0 }
 0x24f   : > { %v1173_v15 = vpop.f32.mrf.mxu1 }
 0x250   : > { %v611_v17 = vadd.f32 %v1173_v15, %v1074_v56  ;;  %1190 = vmatprep.mubr.bf16.mxu0 %v622_v13  ;;  %v618_v22 = vmax.f32 %v600_v16, 0.0 }
 0x251   : > { %v602_v19 = vpop.f32.mrf.mxu1  ;;  %1191 = vmatmul.mubr.bf16.vlgmr.msra.gmra.mxu0 %v623_v14 }
 0x252   : > { %v603_v20 = vadd.f32 %v1074_v56, %v602_v19  ;;  %v621_v21 = vmax.f32 %v611_v17, 0.0 }
 0x254   : > { %v619_v23 = vmax.f32 %v603_v20, 0.0  ;;  %v625_v26 = vpack.c.bf16 %v621_v21, %v620_v24 }
 0x256   : > { %v624_v25 = vpack.c.bf16 %v619_v23, %v618_v22 }
 0x258   : > { %1194 = vmatprep.mubr.bf16.mxu0 %v624_v25 }
 0x259   : > { %1195 = vmatmul.mubr.bf16.gmra.mxu0 %v625_v26 }
 0x311   : > { %v1192_v29 = vpop.f32.mrf.mxu0 }
 0x312   : > { %v1859_v38 = vadd.f32 %v1192_v29, %v1083_v30 }
 0x313   : > { %v728_v32 = vpop.f32.mrf.mxu0 }
 0x314   : > { %v1857_v35 = vadd.f32 %v1083_v30, %v728_v32  ;;  %v781_v45 = vsel %vm773_vm2, %v1859_v38, 0.0 }
 0x315   : > { %v1193_v36 = vpop.f32.mrf.mxu0  ;;  %v808_v55 = vmul.f32 %v781_v45, %v781_v45 }
 0x316   : > { %v779_v41 = vsel %vm771_vm1, %v1857_v35, 0.0  ;;  %v1862_v42 = vadd.f32 %v1193_v36, %v1083_v30 }
 0x317   : > { %v731_v40 = vpop.f32.mrf.mxu0  ;;  %v806_v48 = vmul.f32 %v779_v41, %v779_v41 }
 0x318   : > { %v1864_v43 = vadd.f32 %v1083_v30, %v731_v40  ;;  %v782_v53 = vsel %vm774_vm4, %v1862_v42, 0.0 }
 0x319   : > { %v1196_v44 = vpop.f32.mrf.mxu0  ;;  %v809_v62 = vmul.f32 %v782_v53, %v782_v53 }
 0x31a   : > { %v780_v46 = vsel %vm772_vm3, %v1864_v43, 0.0  ;;  %v1871_v60 = vadd.f32 %v1196_v44, %v1083_v30 }
 0x31b   : > { %v791_v49 = vadd.f32 %v780_v46, %v779_v41  ;;  %v807_v50 = vmul.f32 %v780_v46, %v780_v46  ;;  %v744_v51 = vpop.f32.mrf.mxu0 }
 0x31c   : > { %v1869_v54 = vadd.f32 %v1083_v30, %v744_v51  ;;  %v785_v15 = vsel %vm777_vm6, %v1871_v60, 0.0 }
 0x31d   : > { %v792_v56 = vadd.f32 %v791_v49, %v781_v45  ;;  %v814_v57 = vadd.f32 %v807_v50, %v806_v48  ;;  %v1197_v58 = vpop.f32.mrf.mxu0  ;;  %v812_v21 = vmul.f32 %v785_v15, %v785_v15 }
 0x31e   : > { %v783_v61 = vsel %vm775_vm5, %v1869_v54, 0.0  ;;  %v756_v8 = vadd.f32 %v1197_v58, %v1083_v30 }
 0x31f   : > { %v815_v63 = vadd.f32 %v814_v57, %v808_v55  ;;  %v793_v3 = vadd.f32 %v792_v56, %v782_v53  ;;  %v747_v5 = vpop.f32.mrf.mxu0  ;;  %v810_v13 = vmul.f32 %v783_v61, %v783_v61  ;;  %v1092_v56 = vld [vmem:[%s1803_s26 + $0x2] ss:$0 sm:$0xff] }
 0x320   : > { %v748_v9 = vadd.f32 %v1083_v30, %v747_v5  ;;  %v786_v20 = vsel %vm778_vm8, %v756_v8, 0.0 }
 0x321   : > { %v794_v12 = vadd.f32 %v793_v3, %v783_v61  ;;  %v816_v14 = vadd.f32 %v815_v63, %v809_v62  ;;  %v813_v24 = vmul.f32 %v786_v20, %v786_v20 }
 0x322   : > { %v784_v16 = vsel %vm776_vm7, %v748_v9, 0.0 }
 0x323   : > { %v817_v17 = vadd.f32 %v816_v14, %v810_v13  ;;  %v795_v18 = vadd.f32 %v794_v12, %v784_v16  ;;  %v811_v19 = vmul.f32 %v784_v16, %v784_v16  ;;  %v1093_v13 = vld [vmem:[%s1803_s26 + $0x3] ss:$0 sm:$0xff] }
 0x325   : > { %v796_v22 = vadd.f32 %v795_v18, %v785_v15  ;;  %v818_v23 = vadd.f32 %v817_v17, %v811_v19 }
 0x327   : > { %v797_v25 = vadd.f32 %v796_v22, %v786_v20  ;;  %v819_v26 = vadd.f32 %v818_v23, %v812_v21 }
 0x329   : > { %v798_v27 = vrot.slane %v797_v25, 4  ;;  %v820_v28 = vadd.f32 %v819_v26, %v813_v24 }
 0x32b   : > { %v799_v29 = vadd.f32 %v798_v27, %v797_v25  ;;  %v821_v30 = vrot.slane %v820_v28, 4 }
 0x32d   : > { %v800_v31 = vrot.slane %v799_v29, 2  ;;  %v822_v32 = vadd.f32 %v821_v30, %v820_v28 }
 0x32f   : > { %v801_v33 = vadd.f32 %v800_v31, %v799_v29  ;;  %v823_v34 = vrot.slane %v822_v32, 2 }
 0x331   : > { %v802_v36 = vrot.slane %v801_v33, 1  ;;  %v824_v37 = vadd.f32 %v823_v34, %v822_v32 }
 0x333   : > { %v803_v40 = vadd.f32 %v802_v36, %v801_v33  ;;  %v825_v41 = vrot.slane %v824_v37, 1 }
 0x335   : > { %v805_v44 = vmul.f32 %v804_v39, %v803_v40  ;;  %v826_v45 = vadd.f32 %v825_v41, %v824_v37 }
 0x337   : > { %v827_v46 = vmul.f32 %v826_v45, %v804_v39  ;;  %v828_v47 = vmul.f32 %v805_v44, %v805_v44  ;;  %v831_v51 = vsub.f32 %v1857_v35, %v805_v44  ;;  %v832_v52 = vsub.f32 %v1864_v43, %v805_v44 }
 0x338   : > { %v833_v53 = vsub.f32 %v1859_v38, %v805_v44  ;;  %v834_v55 = vsub.f32 %v1862_v42, %v805_v44  ;;  %v835_v57 = vsub.f32 %v1869_v54, %v805_v44  ;;  %v836_v58 = vsub.f32 %v748_v9, %v805_v44 }
 0x339   : > { %v829_v48 = vsub.f32 %v827_v46, %v828_v47  ;;  %v837_v59 = vsub.f32 %v1871_v60, %v805_v44  ;;  %v838_v61 = vsub.f32 %v756_v8, %v805_v44  ;;  %v843_v62 = vmul.f32 %v1092_v56, %v831_v51 }
 0x33a   : > { %v844_v63 = vmul.f32 %v1092_v56, %v832_v52  ;;  %v845_v3 = vmul.f32 %v1092_v56, %v833_v53  ;;  %v846_v5 = vmul.f32 %v1092_v56, %v834_v55  ;;  %v847_v35 = vmul.f32 %v1092_v56, %v835_v57 }
 0x33b   : > { %v830_v49 = vmax.f32 %v829_v48, 0.0  ;;  %v848_v14 = vmul.f32 %v1092_v56, %v836_v58  ;;  %v849_v43 = vmul.f32 %v1092_v56, %v837_v59  ;;  %v850_v15 = vmul.f32 %v1092_v56, %v838_v61 }
 0x33d   : > { %v851_v50 = vadd.f32 1e-05, %v830_v49 }
 0x33f   : > { %1305 = vrsqrt.f32 %v851_v50 }
 0x34c   : > { %v1306_v12 = vpop.eup %1305 }
 0x34d   : > { %v853_v38 = vmul.f32 %v1306_v12, %v843_v62  ;;  %v854_v42 = vmul.f32 %v1306_v12, %v844_v63  ;;  %v855_v16 = vmul.f32 %v1306_v12, %v845_v3  ;;  %v856_v54 = vmul.f32 %v1306_v12, %v846_v5 }
 0x34e   : > { %v857_v9 = vmul.f32 %v1306_v12, %v847_v35  ;;  %v858_v17 = vmul.f32 %v1306_v12, %v848_v14  ;;  %v859_v60 = vmul.f32 %v1306_v12, %v849_v43  ;;  %v860_v8 = vmul.f32 %v1306_v12, %v850_v15 }
 0x34f   : > { %v865_v18 = vadd.f32 %v1093_v13, %v853_v38  ;;  %v866_v19 = vadd.f32 %v1093_v13, %v854_v42  ;;  %v867_v20 = vadd.f32 %v1093_v13, %v855_v16  ;;  %v868_v21 = vadd.f32 %v1093_v13, %v856_v54 }
 0x350   : > { %v869_v22 = vadd.f32 %v1093_v13, %v857_v9  ;;  %v870_v23 = vadd.f32 %v1093_v13, %v858_v17  ;;  %v871_v24 = vadd.f32 %v1093_v13, %v859_v60  ;;  %v872_v25 = vadd.f32 %v1093_v13, %v860_v8 }
 0x351   : > { %v873_v26 = vmax.f32 %v865_v18, 0.0  ;;  %v874_v27 = vmax.f32 %v866_v19, 0.0  ;;  %v875_v28 = vmax.f32 %v867_v20, 0.0  ;;  %v876_v29 = vmax.f32 %v868_v21, 0.0 }
 0x352   : > { %v877_v30 = vmax.f32 %v869_v22, 0.0  ;;  %v878_v31 = vmax.f32 %v870_v23, 0.0  ;;  %v879_v32 = vmax.f32 %v871_v24, 0.0  ;;  %v880_v33 = vmax.f32 %v872_v25, 0.0 }
 0x353   : > { %v881_v34 = vadd.f32 %v873_v26, %v1828_v10  ;;  %v882_v36 = vadd.f32 %v874_v27, %v1831_v11  ;;  %v883_v37 = vadd.f32 %v875_v28, %v1821_v6  ;;  %v884_v39 = vadd.f32 %v876_v29, %v1823_v7 }
 0x354   : > { %v885_v40 = vadd.f32 %v877_v30, %v1813_v2  ;;  %v886_v10 = vadd.f32 %v878_v31, %v1817_v4  ;;  %v887_v11 = vadd.f32 %v879_v32, %v1809_v0  ;;  %v888_v6 = vadd.f32 %v880_v33, %v1811_v1 }
 0x355   : > { %889 = vst [vmem:[%s345_s20] sm:$0xff] %v881_v34  ;;  %890 = vst [vmem:[%s345_s20 + $0x8] sm:$0xff] %v882_v36 }
 0x356   : > { %891 = vst [vmem:[%s345_s20 + $0x10] sm:$0xff] %v883_v37  ;;  %892 = vst [vmem:[%s345_s20 + $0x18] sm:$0xff] %v884_v39 }
 0x357   : > { %893 = vst [vmem:[%s345_s20 + $0x20] sm:$0xff] %v885_v40  ;;  %894 = vst [vmem:[%s345_s20 + $0x28] sm:$0xff] %v886_v10 }
 0x358   : > { %895 = vst [vmem:[%s345_s20 + $0x30] sm:$0xff] %v887_v11  ;;  %896 = vst [vmem:[%s345_s20 + $0x38] sm:$0xff] %v888_v6 }
 0x359   : > { %1456 = shalt.err (!%p1453_p13)
}
 0x35a   : > { %s1457_s1 = scalar_lea.hbm %s1893_s25, 1024  ;;  %s1461_s12 = scalar_lea.hbm %s1947_s5, 2048 }
 0x35b   : > { %p1458_p12 = scmp.ne.s32.totalorder %s1893_s25, %s1457_s1  ;;  %p1462_p0 = scmp.lt.s32.totalorder %s1893_s25, %s1947_s5 }
 0x35c   : > { %p1463_p7 = scmp.lt.s32.totalorder %s1461_s12, %s1457_s1 }
 0x35d   : > { %p1459_p6 = pnand %p1458_p12, %p1994_p9 }
 0x35e   : > { %p1464_p3 = por %p1463_p7, %p1462_p0 }
 0x35f   : > { %p1460_p2 = pneg %p1459_p6 }
 0x361   : > { %p1465_p8 = pnand %p1464_p3, %p1460_p2 }
 0x363   : > { %1468 = shalt.err (!%p1465_p8)
}
 0x364   : > { %s1535_s13 = smov 128   ;;  %s1536_s14 = smov 8  }
 0x365   : > { %1214 = dma.vmem_to_hbm [thread:$0]  (%p1994_p9), %s1895_s2, 1024, %s1893_s25, %s898_s0, %s1535_s13, %s1535_s13, %s1536_s14  }
 0x366 PF: > { %s926_s26 = sand.u32 1, %s1511_s18   ;;  %p1995_p10 = scmp.ne.s32.totalorder %s1972_s6, 0 }
 0x367   : > { %p1996_p1 = scmp.ge.s32.totalorder %s1523_s21, 2  ;;  %s927_s29 = scalar_lea.sflag [#allocation4], %s926_s26 }
 0x369   : > { %p1234_p11 = pnand %p1996_p1, %p1995_p10 }
 0x36b   : > { %p1235_p5 = pneg %p1234_p11 }
 0x36d   : > { %1506 = dma.done.wait (%p1235_p5), %s927_s29, 1024  }
 0x36e   : > { %1508 = vsyncadd (%p1235_p5), %s927_s29, 4294966272  ;;  %s1997_s21 = sld [smem:[#allocation19_spill]]  ;;  %s2000_s18 = smov %s1515_s19 }
 0x36f   : > { %s1998_s9 = sld [smem:[#allocation18_spill]] }
 0x370   : > { %s1999_s20 = sld [smem:[#allocation20_spill]] }
 0x374   : > { %p22_p4 = scmp.ge.s32.totalorder %s1997_s21, 4  }
 0x375   : > { %s2001_s19 = smov %s1998_s9 }
 0x376   :  { %24 = sbr.rel (!%p22_p4) target bundleno = 13 (0xd), region = 117 }
 0x37b   :  { %932 = vsyncpa [#allocation3], 1 }
 0x37c   :  { %934 = vsyncpa [#allocation3 + $0x1], 1 }
 0x37d   :  { %935 = vsyncpa [#allocation6], 1 }
 0x37e   :  { %937 = vsyncpa [#allocation6 + $0x1], 1 }
 0x37f   :  { %938 = vsyncpa [#allocation9], 1 }
 0x380   :  { %939 = vsyncpa [#allocation4], 1 }
 0x381   :  { %941 = vsyncpa [#allocation4 + $0x1], 1 }

</bundles_post_ra>
